<compile_context>
chip_gen: v7x
topology: tpu7x:2x2x1
jax: 0.10.0
libtpu: 0.0.40
codegen_flags: <defaults>
</compile_context>

<pallas_src>
import functools

import jax
import jax.numpy as jnp
from jax.experimental import pallas as pl
from jax.experimental.pallas import tpu as pltpu


def _nce_softmax_loss_kernel(x_ref, o_ref, m_ref, l_ref, x0_ref, *,
                             n_rows, n_cols, tile_b, tile_c,
                             mask_rows, mask_cols):
    bi = pl.program_id(0)            # batch-tile index   (outer, "parallel")
    ci = pl.program_id(1)            # class-tile index   (inner, "arbitrary")
    n_ci = pl.num_programs(1)

    # Native-dtype DMA; upcast per tile in-kernel.
    x = x_ref[...].astype(jnp.float32)                       # [tile_b, tile_c]

    if mask_cols:
        # Padded class columns of the last class tile must not contribute.
        # (1, tile_c) iota broadcasts across sublanes in the where.
        col = jax.lax.broadcasted_iota(jnp.int32, (1, tile_c), 1) + ci * tile_c
        x = jnp.where(col < n_cols, x, -jnp.inf)

    @pl.when(ci == 0)
    def _():
        # Fresh batch tile: reset online-logsumexp state and capture the
        # positive logit x[:, 0] (class 0 lives in the first class tile).
        m_ref[...] = jnp.full_like(m_ref, -jnp.inf)
        l_ref[...] = jnp.zeros_like(l_ref)
        x0_ref[...] = x[:, 0:1]

    # Online (flash-style) logsumexp update over the class axis.
    m_prev = m_ref[...]
    m_new = jnp.maximum(m_prev, jnp.max(x, axis=-1, keepdims=True))
    l_ref[...] = (l_ref[...] * jnp.exp(m_prev - m_new)
                  + jnp.sum(jnp.exp(x - m_new), axis=-1, keepdims=True))
    m_ref[...] = m_new

    @pl.when(ci == n_ci - 1)
    def _():
        lse = jnp.log(l_ref[...]) + m_ref[...]                # [tile_b, 1]
        per_row = lse - x0_ref[...]                           # [tile_b, 1]
        if mask_rows:
            # Padded rows of the last batch tile contain garbage (possibly
            # inf/NaN); select() removes them before the sum.
            row = (jax.lax.broadcasted_iota(jnp.int32, (tile_b, 1), 0)
                   + bi * tile_b)
            per_row = jnp.where(row < n_rows, per_row, 0.0)
        s = jnp.sum(per_row)                                  # scalar f32
        # One lane-aligned (1, 8, 128) block per batch tile; the wrapper
        # reads element [:, 0, 0] and sums over batch tiles.
        o_ref[...] = jnp.broadcast_to(s, o_ref.shape)


def _round_down(v, m):
    return max(m, (v // m) * m)


def nce_softmax_loss(x, *, tile_b=None, tile_c=None,
                     target_block_bytes=8 * 1024 * 1024,
                     vmem_limit_bytes=32 * 1024 * 1024):
    """Info-NCE softmax cross-entropy with target class 0 (scalar f32 loss).

    Matches torch.nn.CrossEntropyLoss()(x.squeeze(), zeros(bsz).long()).

    Defaults keep each input block <= ~8 MiB (double-buffered -> ~16 MiB),
    which fits v7x's 32 MiB scoped VMEM; on v5e/v6e you may raise
    `target_block_bytes` / `vmem_limit_bytes` (or pass explicit tiles).
    """
    bsz = x.shape[0]
    # Safer than .squeeze() (which drops ALL unit dims): collapse trailing
    # dims only, so degenerate shapes can't silently reorder data.
    x2d = x.reshape(bsz, -1)
    n_rows, n_cols = x2d.shape
    itemsize = jnp.dtype(x2d.dtype).itemsize

    # ---- tile selection ------------------------------------------------
    if tile_c is None:
        if n_cols * itemsize * 8 <= target_block_bytes:
            tile_c = n_cols                                   # no class tiling
        else:
            # Large-C (memory-bank NCE): tile the class axis, multiple of 128.
            tile_c = _round_down(target_block_bytes // (128 * itemsize), 128)
    if tile_b is None:
        rows_fit = max(1, target_block_bytes // (tile_c * itemsize))
        if rows_fit >= n_rows:
            tile_b = n_rows                                   # full batch
        else:
            tile_b = _round_down(rows_fit, 8)                 # multiple of 8
    tile_b = min(tile_b, n_rows)
    tile_c = min(tile_c, n_cols)

    grid_b = pl.cdiv(n_rows, tile_b)
    grid_c = pl.cdiv(n_cols, tile_c)
    mask_rows = (n_rows % tile_b) != 0
    mask_cols = (n_cols % tile_c) != 0

    kernel = functools.partial(
        _nce_softmax_loss_kernel,
        n_rows=n_rows, n_cols=n_cols, tile_b=tile_b, tile_c=tile_c,
        mask_rows=mask_rows, mask_cols=mask_cols)

    partial = pl.pallas_call(
        kernel,
        # One lane-aligned (8,128) f32 block per batch tile (4 KiB each).
        out_shape=jax.ShapeDtypeStruct((grid_b, 8, 128), jnp.float32),
        grid_spec=pltpu.PrefetchScalarGridSpec(
            num_scalar_prefetch=0,
            grid=(grid_b, grid_c),
            in_specs=[pl.BlockSpec((tile_b, tile_c), lambda bi, ci: (bi, ci))],
            out_specs=pl.BlockSpec((1, 8, 128), lambda bi, ci: (bi, 0, 0)),
            scratch_shapes=[
                pltpu.VMEM((tile_b, 1), jnp.float32),  # running max m
                pltpu.VMEM((tile_b, 1), jnp.float32),  # running sumexp l
                pltpu.VMEM((tile_b, 1), jnp.float32),  # x[:, 0] (positive)
            ],
        ),
        compiler_params=pltpu.CompilerParams(
            # Batch tiles are independent -> "parallel" (megacore sharding on
            # v7x, no-op on single-TC chips). Class axis is the reduction
            # (output block revisited across it) -> "arbitrary", innermost.
            dimension_semantics=("parallel", "arbitrary"),
            vmem_limit_bytes=vmem_limit_bytes,
        ),
    )(x2d)

    # Finish the mean: one tiny reduction over grid_b partial sums.
    return jnp.sum(partial[:, 0, 0]) * (1.0 / n_rows)


if __name__ == "__main__":
    key = jax.random.PRNGKey(0)
    k0, k1, k2 = jax.random.split(key, 3)

    def ref_loss(x):
        b = x.shape[0]
        xr = x.reshape(b, -1).astype(jnp.float32)
        return jnp.mean(jax.scipy.special.logsumexp(xr, axis=-1) - xr[:, 0])

    # 1) Toy shape straight from the PyTorch module: [bsz, 1 + n_negatives, 1].
    x_small = jax.random.normal(k0, (8, 17, 1), dtype=jnp.float32)
    loss_small = nce_softmax_loss(x_small)
    jax.block_until_ready(loss_small)
    assert jnp.allclose(loss_small, ref_loss(x_small), atol=1e-5, rtol=1e-5), (
        loss_small, ref_loss(x_small))

    # 2) Exercise batch tiling + class tiling + edge masking
    #    (B % tile_b != 0 and C % tile_c != 0).
    x_med = jax.random.normal(k1, (20, 300, 1), dtype=jnp.float32)
    loss_med = nce_softmax_loss(x_med, tile_b=8, tile_c=128)
    jax.block_until_ready(loss_med)
    assert jnp.allclose(loss_med, ref_loss(x_med), atol=1e-4, rtol=1e-5), (
        loss_med, ref_loss(x_med))

    # 3) Native bf16 logits stay bf16 through the DMA; upcast is in-kernel.
    x_bf16 = jax.random.normal(k2, (16, 256), dtype=jnp.bfloat16)
    loss_bf16 = nce_softmax_loss(x_bf16, tile_b=16, tile_c=128)
    jax.block_until_ready(loss_bf16)
    assert jnp.allclose(loss_bf16, ref_loss(x_bf16), atol=1e-4, rtol=1e-4), (
        loss_bf16, ref_loss(x_bf16))

    print("KERNEL_OK")
</pallas_src>

<mosaic_0001>
module attributes {stable_mosaic.version = 11 : i64} {
  func.func @_nce_softmax_loss_kernel(%arg0: i32, %arg1: i32, %arg2: memref<8x17xf32, #tpu.memory_space<vmem>>, %arg3: memref<1x8x128xf32, #tpu.memory_space<vmem>>, %arg4: memref<8x1xf32, #tpu.memory_space<vmem>>, %arg5: memref<8x1xf32, #tpu.memory_space<vmem>>, %arg6: memref<8x1xf32, #tpu.memory_space<vmem>>) attributes {dimension_semantics = [#tpu.dimension_semantics<parallel>, #tpu.dimension_semantics<arbitrary>], iteration_bounds = array<i64: 1, 1>, scalar_prefetch = 0 : i64, scratch_operands = 3 : i64, tpu.core_type = #tpu.core_type<tc>, window_params = [{transform_indices = @transform_0, window_bounds = array<i64: 8, 17>}, {transform_indices = @transform_1, window_bounds = array<i64: 1, 8, 128>}]} {
    %c0 = arith.constant 0 : index
    %c0_0 = arith.constant 0 : index
    %0 = vector.load %arg2[%c0, %c0_0] : memref<8x17xf32, #tpu.memory_space<vmem>>, vector<8x17xf32>
    %c0_i32 = arith.constant 0 : i32
    %1 = arith.cmpi eq, %arg1, %c0_i32 : i32
    %2 = arith.extui %1 : i1 to i32
    %c0_i32_1 = arith.constant 0 : i32
    %3 = arith.cmpi ne, %2, %c0_i32_1 : i32
    scf.if %3 {
      %cst_13 = arith.constant 0xFF800000 : f32
      %23 = vector.broadcast %cst_13 : f32 to vector<8x1xf32>
      %c0_14 = arith.constant 0 : index
      %c0_15 = arith.constant 0 : index
      %24 = vector.load %arg4[%c0_14, %c0_15] : memref<8x1xf32, #tpu.memory_space<vmem>>, vector<8x1xf32>
      tpu.vector_store %arg4[%c0_14, %c0_15], %23 {strides = array<i32>} : memref<8x1xf32, #tpu.memory_space<vmem>>, vector<8x1xf32>,
      %cst_16 = arith.constant 0.000000e+00 : f32
      %25 = vector.broadcast %cst_16 : f32 to vector<8x1xf32>
      %c0_17 = arith.constant 0 : index
      %c0_18 = arith.constant 0 : index
      %26 = vector.load %arg5[%c0_17, %c0_18] : memref<8x1xf32, #tpu.memory_space<vmem>>, vector<8x1xf32>
      tpu.vector_store %arg5[%c0_17, %c0_18], %25 {strides = array<i32>} : memref<8x1xf32, #tpu.memory_space<vmem>>, vector<8x1xf32>,
      %27 = vector.extract_strided_slice %0 {offsets = [0, 0], sizes = [8, 1], strides = [1, 1]} : vector<8x17xf32> to vector<8x1xf32>
      %c0_19 = arith.constant 0 : index
      %c0_20 = arith.constant 0 : index
      %28 = vector.load %arg6[%c0_19, %c0_20] : memref<8x1xf32, #tpu.memory_space<vmem>>, vector<8x1xf32>
      tpu.vector_store %arg6[%c0_19, %c0_20], %27 {strides = array<i32>} : memref<8x1xf32, #tpu.memory_space<vmem>>, vector<8x1xf32>,
    } else {
    }
    %c0_2 = arith.constant 0 : index
    %c0_3 = arith.constant 0 : index
    %4 = vector.load %arg4[%c0_2, %c0_3] : memref<8x1xf32, #tpu.memory_space<vmem>>, vector<8x1xf32>
    %cst = arith.constant dense<0xFF800000> : vector<8xf32>
    %5 = vector.multi_reduction <maximumf>, %0, %cst [1] : vector<8x17xf32> to vector<8xf32>
    %6 = vector.shape_cast %5 : vector<8xf32> to vector<8x1xf32>
    %7 = arith.maximumf %4, %6 : vector<8x1xf32>
    %c0_4 = arith.constant 0 : index
    %c0_5 = arith.constant 0 : index
    %8 = vector.load %arg5[%c0_4, %c0_5] : memref<8x1xf32, #tpu.memory_space<vmem>>, vector<8x1xf32>
    %9 = arith.subf %4, %7 : vector<8x1xf32>
    %10 = math.exp %9 : vector<8x1xf32>
    %11 = arith.mulf %8, %10 : vector<8x1xf32>
    %12 = vector.broadcast %7 : vector<8x1xf32> to vector<8x17xf32>
    %13 = arith.subf %0, %12 : vector<8x17xf32>
    %14 = math.exp %13 : vector<8x17xf32>
    %cst_6 = arith.constant dense<0.000000e+00> : vector<8xf32>
    %15 = vector.multi_reduction <add>, %14, %cst_6 [1] : vector<8x17xf32> to vector<8xf32>
    %16 = vector.shape_cast %15 : vector<8xf32> to vector<8x1xf32>
    %17 = arith.addf %11, %16 : vector<8x1xf32>
    %c0_7 = arith.constant 0 : index
    %c0_8 = arith.constant 0 : index
    %18 = vector.load %arg5[%c0_7, %c0_8] : memref<8x1xf32, #tpu.memory_space<vmem>>, vector<8x1xf32>
    tpu.vector_store %arg5[%c0_7, %c0_8], %17 {strides = array<i32>} : memref<8x1xf32, #tpu.memory_space<vmem>>, vector<8x1xf32>,
    %c0_9 = arith.constant 0 : index
    %c0_10 = arith.constant 0 : index
    %19 = vector.load %arg4[%c0_9, %c0_10] : memref<8x1xf32, #tpu.memory_space<vmem>>, vector<8x1xf32>
    tpu.vector_store %arg4[%c0_9, %c0_10], %7 {strides = array<i32>} : memref<8x1xf32, #tpu.memory_space<vmem>>, vector<8x1xf32>,
    %c0_i32_11 = arith.constant 0 : i32
    %20 = arith.cmpi eq, %arg1, %c0_i32_11 : i32
    %21 = arith.extui %20 : i1 to i32
    %c0_i32_12 = arith.constant 0 : i32
    %22 = arith.cmpi ne, %21, %c0_i32_12 : i32
    scf.if %22 {
      %c0_13 = arith.constant 0 : index
      %c0_14 = arith.constant 0 : index
      %23 = vector.load %arg5[%c0_13, %c0_14] : memref<8x1xf32, #tpu.memory_space<vmem>>, vector<8x1xf32>
      %24 = math.log %23 : vector<8x1xf32>
      %c0_15 = arith.constant 0 : index
      %c0_16 = arith.constant 0 : index
      %25 = vector.load %arg4[%c0_15, %c0_16] : memref<8x1xf32, #tpu.memory_space<vmem>>, vector<8x1xf32>
      %26 = arith.addf %24, %25 : vector<8x1xf32>
      %c0_17 = arith.constant 0 : index
      %c0_18 = arith.constant 0 : index
      %27 = vector.load %arg6[%c0_17, %c0_18] : memref<8x1xf32, #tpu.memory_space<vmem>>, vector<8x1xf32>
      %28 = arith.subf %26, %27 : vector<8x1xf32>
      %29 = vector.shape_cast %28 : vector<8x1xf32> to vector<1x8x1xf32>
      %cst_19 = arith.constant dense<0.000000e+00> : vector<1xf32>
      %30 = vector.multi_reduction <add>, %29, %cst_19 [1, 2] : vector<1x8x1xf32> to vector<1xf32>
      %31 = vector.shape_cast %30 : vector<1xf32> to vector<1x1x1xf32>
      %32 = vector.extract %31[0, 0, 0] : f32 from vector<1x1x1xf32>
      %33 = vector.broadcast %32 : f32 to vector<1x8x128xf32>
      %c0_20 = arith.constant 0 : index
      %c0_21 = arith.constant 0 : index
      %c0_22 = arith.constant 0 : index
      %34 = vector.load %arg3[%c0_20, %c0_21, %c0_22] : memref<1x8x128xf32, #tpu.memory_space<vmem>>, vector<1x8x128xf32>
      tpu.vector_store %arg3[%c0_20, %c0_21, %c0_22], %33 {strides = array<i32>} : memref<1x8x128xf32, #tpu.memory_space<vmem>>, vector<1x8x128xf32>,
    } else {
    }
    return
  }
  func.func @transform_0(%arg0: i32, %arg1: i32) -> (i32, i32) {
    %c0_i32 = arith.constant 0 : i32
    return %arg0, %arg1 : i32, i32
  }
  func.func @transform_1(%arg0: i32, %arg1: i32) -> (i32, i32, i32) {
    %c0_i32 = arith.constant 0 : i32
    %c0_i32_0 = arith.constant 0 : i32
    %c0_i32_1 = arith.constant 0 : i32
    return %arg0, %c0_i32, %c0_i32_0 : i32, i32, i32
  }
}

</mosaic_0001>

<bundles_post_ra>
// kernel: tpu_custom_call.1
= control target key start
LH: loop header
LB: loop body
LE: loop exit
PB: predicated region body
PF: predicated region fallthrough
CT: control target
= control target key end

     0   :  { %6 = vsyncpa [#allocation6], 0  ;;  %s202_s0 = inlined_call_operand.hbm [shape: f32[8,17], index: 0, kind: input, shape index: {}]   ;;  %s203_s1 = inlined_call_operand.hbm [shape: f32[1,8,128], index: 1, kind: output, shape index: {}]  }
   0x1   :  { %7 = vsyncpa [#allocation7], 0  ;;  %s155_s6 = smov [#allocation5]   ;;  %s107_s10 = scalar_lea.hbm %s202_s0, 128 }
   0x2   :  { %s14_s7 = sshll.u32 %s155_s6, 4  ;;  %p108_p0 = scmp.ne.s32.totalorder %s202_s0, %s107_s10  ;;  %s15_s7 = int_to_ptr.vmem [resolvable:$true] %s14_s7 }
   0x3   :  { %p111_p1 = scmp.lt.u32.totalorder %s107_s10, %s202_s0 }
   0x5   :  { %p113_p2 = pnand %p111_p1, %p108_p0 }
   0x7   :  { %116 = shalt.err (!%p113_p2)
}
   0x8   :  { %s117_s15 = scalar_lea.vmem %s15_s7, 128  ;;  %p122_p4 = scmp.lt.s32.totalorder %s15_s7, %s15_s7 }
   0x9   :  { %p118_p3 = scmp.ne.s32.totalorder %s15_s7, %s117_s15  ;;  %p123_p5 = scmp.lt.s32.totalorder %s117_s15, %s117_s15 }
   0xb   :  { %p124_p6 = por %p123_p5, %p122_p4 }
   0xd   :  { %p125_p7 = pnand %p124_p6, %p118_p3 }
   0xf   :  { %128 = shalt.err (!%p125_p7)
}
  0x10   :  { %17 = dma.hbm_to_vmem [thread:$0]  %s202_s0, 128, %s15_s7, [#allocation6]  }
  0x11   :  { %151 = dma.done.wait [#allocation6], 128  }
  0x12   :  { %152 = vsyncadd [#allocation6], 4294967168  ;;  %vm26_vm0 = vcmask 7168   ;;  %v156_v0 = vmov -inf   ;;  %vm31_vm1 = vcmask 138240   ;;  %v21_v1 = vld [vmem:[#allocation5] sm:$0xff] }
  0x13   :  { %27 = vst.msk [vmem:[#allocation2] sm:$0xff] %vm26_vm0, %v156_v0  ;;  %v32_v2 = vsel %vm31_vm1, %v21_v1, -inf  ;;  %29 = vst.msk [vmem:[#allocation4] sm:$0xff] %vm26_vm0, %v21_v1  ;;  %v157_v3 = vmov 0   ;;  %v158_v4 = vmov 0.0   ;;  %s159_s0 = smov [#allocation8]  }
  0x14   :  { %33 = vmax.xlane.f32.xlu0 %v32_v2  ;;  %28 = vst.msk [vmem:[#allocation3] sm:$0xff] %vm26_vm0, %v158_v4  ;;  %s84_s18 = sshll.u32 %s159_s0, 4  ;;  %s85_s18 = int_to_ptr.vmem [resolvable:$true] %s84_s18 }
  0x15   :  { %100 = vset.pattern.permute.xlu0 %v157_v3  ;;  %s129_s20 = scalar_lea.vmem %s85_s18, 128  ;;  %p134_p9 = scmp.lt.s32.totalorder %s85_s18, %s85_s18 }
  0x16   :  { %p130_p8 = scmp.ne.s32.totalorder %s85_s18, %s129_s20  ;;  %p135_p10 = scmp.lt.s32.totalorder %s129_s20, %s129_s20 }
  0x18   :  { %p136_p11 = por %p135_p10, %p134_p9 }
  0x1a   :  { %v30_v5 = vld [vmem:[#allocation2] sm:$0xff]  ;;  %v64_v24 = vld [vmem:[#allocation4] sm:$0xff]  ;;  %p137_p12 = pnand %p136_p11, %p130_p8 }
  0x1b   :  { %v36_v16 = vld [vmem:[#allocation3] sm:$0xff] }
  0xa1   :  { %v34_v6 = vpop.xlane.xlu0 %33 }
  0xa2   :  { %v35_v7 = vmax.f32 %v30_v5, %v34_v6 }
  0xa4   :  { %v37_v8 = vsub.f32 %v30_v5, %v35_v7  ;;  %55 = vst.msk [vmem:[#allocation2] sm:$0xff] %vm26_vm0, %v35_v7  ;;  %43 = vperm.xlu0 %100, %v35_v7  }
  0xa6   :  { %v38_v14 = vmul.f32 1.442695, %v37_v8 }
  0xab   :  { %v62_v23 = vld [vmem:[#allocation2] sm:$0xff] }
 0x123   :  { %v44_v9 = vpop.permute.xlu0 %43 }
 0x124   :  { %v46_v10 = vsub.f32 %v21_v1, %v44_v9 }
 0x126   :  { %v47_v11 = vmul.f32 1.442695, %v46_v10 }
 0x128   :  { %101 = vpow2.f32 %v47_v11 }
 0x129   :  { %103 = vpow2.f32 %v38_v14 }
 0x132   :  { %v102_v12 = vpop.eup %101 }
 0x133   :  { %v49_v13 = vsel %vm31_vm1, %v102_v12, 0.0  ;;  %v104_v15 = vpop.eup %103 }
 0x134   :  { %50 = vadd.xlane.f32.xlu1 %v49_v13  ;;  %v40_v17 = vmul.f32 %v104_v15, %v36_v16 }
 0x1c1   :  { %v51_v18 = vpop.xlane.xlu1 %50 }
 0x1c2   :  { %v52_v19 = vadd.f32 %v51_v18, %v40_v17 }
 0x1c4   :  { %54 = vst.msk [vmem:[#allocation3] sm:$0xff] %vm26_vm0, %v52_v19 }
 0x1cb   :  { %v59_v20 = vld [vmem:[#allocation3] sm:$0xff] }
 0x1cc   :  { %105 = vlog2.f32 %v59_v20 }
 0x1d6   :  { %v106_v21 = vpop.eup %105 }
 0x1d7   :  { %v61_v22 = vmul.f32 0.6931472, %v106_v21 }
 0x1d9   :  { %v63_v25 = vadd.f32 %v62_v23, %v61_v22 }
 0x1db   :  { %v65_v26 = vsub.f32 %v63_v25, %v64_v24 }
 0x1dd   :  { %v66_v27 = vsel %vm26_vm0, %v65_v26, 0.0 }
 0x1de   :  { %67 = vadd.xlane.f32.xlu1 %v66_v27 }
 0x26b   :  { %v68_v28 = vpop.xlane.xlu1 %67 }
 0x26c   :  { %v69_v29 = vrot.slane %v68_v28, 4 }
 0x26e   :  { %v70_v30 = vadd.f32 %v69_v29, %v68_v28 }
 0x270   :  { %v71_v31 = vrot.slane %v70_v30, 2 }
 0x272   :  { %v72_v32 = vadd.f32 %v71_v31, %v70_v30 }
 0x274   :  { %v73_v33 = vrot.slane %v72_v32, 1 }
 0x276   :  { %v74_v34 = vadd.f32 %v73_v33, %v72_v32 }
 0x278   :  { %93 = vpush %v74_v34 }
 0x2a9   :  { %s94_s19 = spop %93 }
 0x2aa   :  { %v76_v35 = vstv %s94_s19 }
 0x2ab   :  { %77 = vst [vmem:[#allocation8] sm:$0xff] %v76_v35 }
 0x2ac   :  { %140 = shalt.err (!%p137_p12)
}
 0x2ad   :  { %s141_s23 = scalar_lea.hbm %s203_s1, 128 }
 0x2ae   :  { %p142_p13 = scmp.ne.s32.totalorder %s203_s1, %s141_s23  ;;  %p145_p0 = scmp.lt.u32.totalorder %s141_s23, %s203_s1 }
 0x2b0   :  { %p147_p1 = pnand %p145_p0, %p142_p13 }
 0x2b2   :  { %150 = shalt.err (!%p147_p1)
}
 0x2b3   :  { %87 = dma.vmem_to_hbm [thread:$0]  %s85_s18, 128, %s203_s1, [#allocation7]  }
 0x2b4   :  { %153 = dma.done.wait [#allocation7], 128  }
 0x2b5   :  { %154 = vsyncadd [#allocation7], 4294967168 }
 0x2b6   :  { %91 = vsyncpa [#allocation6], 1 }
 0x2b7   :  { %92 = vsyncpa [#allocation7], 1 }

</bundles_post_ra>
